<compile_context>
chip_gen: v6e
topology: v6e:2x2x1
jax: 0.10.0
libtpu: 0.0.40
codegen_flags: <defaults>
</compile_context>

<pallas_src>
import functools

import jax
import jax.numpy as jnp
from jax.experimental import pallas as pl
from jax.experimental.pallas import tpu as pltpu


def _normalize_kernel(x_ref, scale_ref, bias_ref, o_ref, *, row_tile, single_row_tile):
    # x_ref:     (TR, TS) pixel tile (pipelined / double-buffered)
    # scale_ref: (R_pad, 1) resident per-row 1/std      (f32)
    # bias_ref:  (R_pad, 1) resident per-row -mean/std  (f32)
    if single_row_tile:
        sc = scale_ref[...]
        bs = bias_ref[...]
    else:
        # Multi-row-tile grids always have row_tile a multiple of the sublane
        # count and R_pad a multiple of row_tile, so this slice is aligned and
        # always in bounds.
        r0 = pl.multiple_of(pl.program_id(0) * row_tile, row_tile)
        sc = scale_ref[pl.ds(r0, row_tile), :]
        bs = bias_ref[pl.ds(r0, row_tile), :]
    # Pure VPU multiply-add; (TR, 1) columns broadcast across lanes.  f32 math,
    # cast only on the store (exact no-op for f32 inputs).
    y = x_ref[...].astype(jnp.float32) * sc + bs
    o_ref[...] = y.astype(o_ref.dtype)


def _choose_row_split(R0, S0, itemsize, sublane, target_bytes):
    """Pick k sub-rows per (n, c) spatial slab.

    Split each contiguous H*W slab into k sub-rows of length S0//k (kept a
    multiple of 128 so stores stay lane-dense) until (a) there are enough rows
    to fill sublanes / feed the pipeline and (b) one sublane-group row strip
    fits the per-tile byte budget.  A pure row-major reshape, so it is free.
    """
    min_rows = 2 * sublane
    k = 1
    while True:
        S = S0 // k
        need_rows = R0 * k < min_rows
        strip_too_big = sublane * S * itemsize > target_bytes
        if not (need_rows or strip_too_big):
            break
        nk = k * 2
        if S0 % nk != 0 or (S0 // nk) % 128 != 0 or R0 * nk > 8192:
            break
        k = nk
    return k


def _pick_tiles(R, S, itemsize, sublane, target_bytes):
    """(row_tile, col_tile); prefer contiguous full-spatial row strips."""
    if R * S * itemsize <= target_bytes:            # whole slab in one tile
        return R, S
    row_unit = sublane if R >= sublane else R       # full-dim rows when R tiny
    if row_unit * S * itemsize <= target_bytes:     # full-S row strips
        tr = (target_bytes // (S * itemsize)) // row_unit * row_unit
        tr = min(tr, (R // row_unit) * row_unit)
        tr = max(tr, row_unit)
        return tr, S
    # Fallback: spatial dim too wide for even one row strip -> tile columns.
    tr = row_unit
    ts = (target_bytes // (tr * itemsize)) // 128 * 128
    if ts <= 0 or ts >= S:
        ts = S
    return tr, ts


def normalize(x_nchw, mean_c, std_c, *, target_tile_bytes=4 * 1024 * 1024, donate=False):
    """Per-channel normalize of an NCHW tensor: (x - mean[c]) / std[c]."""
    N, C, H, W = x_nchw.shape
    R0, S0 = N * C, H * W
    itemsize = jnp.dtype(x_nchw.dtype).itemsize
    sublane = max(8, 32 // itemsize)                # 8 f32 / 16 bf16 / 32 int8
    target_bytes = max(int(target_tile_bytes), sublane * 128 * itemsize)

    # Re-row each channel slab so vregs pack fully and row strips fit VMEM.
    k = _choose_row_split(R0, S0, itemsize, sublane, target_bytes)
    R, S = R0 * k, S0 // k
    x2d = x_nchw.reshape(R, S)                      # pure row-major reshape

    TR, TS = _pick_tiles(R, S, itemsize, sublane, target_bytes)
    grid = (pl.cdiv(R, TR), pl.cdiv(S, TS))
    R_pad = grid[0] * TR                            # in-kernel row slices never go OOB

    # Fold stats once on the O(C) vectors, in f32:
    #   (x - mean)/std  ==  x * (1/std) + (-mean/std)
    scale_c = (1.0 / std_c).astype(jnp.float32)
    bias_c = (-mean_c / std_c).astype(jnp.float32)
    scale_r = jnp.repeat(jnp.tile(scale_c, N), k)   # row order is (n, c, sub-row)
    bias_r = jnp.repeat(jnp.tile(bias_c, N), k)
    pad = R_pad - R
    scale_rows = jnp.pad(scale_r, (0, pad), constant_values=1.0).reshape(R_pad, 1)
    bias_rows = jnp.pad(bias_r, (0, pad), constant_values=0.0).reshape(R_pad, 1)

    kernel = functools.partial(
        _normalize_kernel, row_tile=TR, single_row_tile=(grid[0] == 1))

    out2d = pl.pallas_call(
        kernel,
        out_shape=jax.ShapeDtypeStruct((R, S), x2d.dtype),
        grid_spec=pltpu.PrefetchScalarGridSpec(
            num_scalar_prefetch=0,
            grid=grid,
            in_specs=[
                # Pixels: pipelined (double-buffered) tiles.
                pl.BlockSpec((TR, TS), lambda i, j: (i, j)),
                # Per-row stats: resident (constant block index -> one fetch,
                # no extra pipelined streams competing for VMEM / DMA).
                pl.BlockSpec((R_pad, 1), lambda i, j: (0, 0)),
                pl.BlockSpec((R_pad, 1), lambda i, j: (0, 0)),
            ],
            out_specs=pl.BlockSpec((TR, TS), lambda i, j: (i, j)),
        ),
        compiler_params=pltpu.CompilerParams(
            # Both axes independent -> megacore sharding on v7x; harmless on
            # single-TC v5e/v6e.
            dimension_semantics=("parallel", "parallel"),
            # Explicit budget: ~16 MiB of double-buffered x/out tiles + small
            # resident stats; leaves headroom inside v7x's 64 MiB physical VMEM
            # and is well under v5e/v6e's 128 MiB.
            vmem_limit_bytes=48 * 1024 * 1024,
        ),
        input_output_aliases=({0: 0} if donate else {}),
    )(x2d, scale_rows, bias_rows)

    return out2d.reshape(N, C, H, W)


if __name__ == "__main__":
    # Deterministic ImageNet stats from the module's __init__.
    mean = jnp.array([0.485, 0.456, 0.406], dtype=jnp.float32)
    std = jnp.array([0.229, 0.224, 0.225], dtype=jnp.float32)

    def ref(x):
        return (x - mean[None, :, None, None]) / std[None, :, None, None]

    key = jax.random.PRNGKey(0)
    k1, k2, k3 = jax.random.split(key, 3)

    # 1) Small NCHW input (batch=2, RGB, 16x16): re-rowing + single-tile path.
    x1 = jax.random.uniform(k1, (2, 3, 16, 16), dtype=jnp.float32)
    y1 = jax.block_until_ready(normalize(x1, mean, std))
    assert y1.shape == x1.shape and y1.dtype == x1.dtype
    assert jnp.allclose(y1, ref(x1), atol=1e-5, rtol=1e-5)

    # 2) Larger spatial input with a small tile budget: exercises the
    #    full-spatial row-strip path with a multi-step (pipelined) row grid.
    x2 = jax.random.uniform(k2, (2, 3, 64, 128), dtype=jnp.float32)
    y2 = jax.block_until_ready(normalize(x2, mean, std, target_tile_bytes=32 * 1024))
    assert y2.shape == x2.shape and y2.dtype == x2.dtype
    assert jnp.allclose(y2, ref(x2), atol=1e-5, rtol=1e-5)

    # 3) Awkward spatial size (H*W not re-rowable) with a tiny budget:
    #    exercises the column-tiling fallback.
    x3 = jax.random.uniform(k3, (2, 3, 16, 24), dtype=jnp.float32)
    y3 = jax.block_until_ready(normalize(x3, mean, std, target_tile_bytes=4 * 1024))
    assert y3.shape == x3.shape and y3.dtype == x3.dtype
    assert jnp.allclose(y3, ref(x3), atol=1e-5, rtol=1e-5)

    print("KERNEL_OK")
</pallas_src>

<mosaic_0001>
module attributes {stable_mosaic.version = 11 : i64} {
  func.func @_normalize_kernel(%arg0: i32, %arg1: i32, %arg2: memref<12x128xf32, #tpu.memory_space<vmem>>, %arg3: memref<12x1xf32, #tpu.memory_space<vmem>>, %arg4: memref<12x1xf32, #tpu.memory_space<vmem>>, %arg5: memref<12x128xf32, #tpu.memory_space<vmem>>) attributes {dimension_semantics = [#tpu.dimension_semantics<parallel>, #tpu.dimension_semantics<parallel>], iteration_bounds = array<i64: 1, 1>, scalar_prefetch = 0 : i64, scratch_operands = 0 : i64, tpu.core_type = #tpu.core_type<tc>, window_params = [{transform_indices = @transform_0, window_bounds = array<i64: 12, 128>}, {pipeline_mode = #tpu.pipeline_mode<synchronous>, transform_indices = @transform_1, window_bounds = array<i64: 12, 1>}, {pipeline_mode = #tpu.pipeline_mode<synchronous>, transform_indices = @transform_2, window_bounds = array<i64: 12, 1>}, {transform_indices = @transform_3, window_bounds = array<i64: 12, 128>}]} {
    %c0 = arith.constant 0 : index
    %c0_0 = arith.constant 0 : index
    %0 = vector.load %arg3[%c0, %c0_0] : memref<12x1xf32, #tpu.memory_space<vmem>>, vector<12x1xf32>
    %c0_1 = arith.constant 0 : index
    %c0_2 = arith.constant 0 : index
    %1 = vector.load %arg4[%c0_1, %c0_2] : memref<12x1xf32, #tpu.memory_space<vmem>>, vector<12x1xf32>
    %c0_3 = arith.constant 0 : index
    %c0_4 = arith.constant 0 : index
    %2 = vector.load %arg2[%c0_3, %c0_4] : memref<12x128xf32, #tpu.memory_space<vmem>>, vector<12x128xf32>
    %3 = vector.broadcast %0 : vector<12x1xf32> to vector<12x128xf32>
    %4 = arith.mulf %2, %3 : vector<12x128xf32>
    %5 = vector.broadcast %1 : vector<12x1xf32> to vector<12x128xf32>
    %6 = arith.addf %4, %5 : vector<12x128xf32>
    %c0_5 = arith.constant 0 : index
    %c0_6 = arith.constant 0 : index
    %7 = vector.load %arg5[%c0_5, %c0_6] : memref<12x128xf32, #tpu.memory_space<vmem>>, vector<12x128xf32>
    tpu.vector_store %arg5[%c0_5, %c0_6], %6 {strides = array<i32>} : memref<12x128xf32, #tpu.memory_space<vmem>>, vector<12x128xf32>,
    return
  }
  func.func @transform_0(%arg0: i32, %arg1: i32) -> (i32, i32) {
    %c0_i32 = arith.constant 0 : i32
    return %arg0, %arg1 : i32, i32
  }
  func.func @transform_1(%arg0: i32, %arg1: i32) -> (i32, i32) {
    %c0_i32 = arith.constant 0 : i32
    %c0_i32_0 = arith.constant 0 : i32
    %c0_i32_1 = arith.constant 0 : i32
    return %c0_i32, %c0_i32_0 : i32, i32
  }
  func.func @transform_2(%arg0: i32, %arg1: i32) -> (i32, i32) {
    %c0_i32 = arith.constant 0 : i32
    %c0_i32_0 = arith.constant 0 : i32
    %c0_i32_1 = arith.constant 0 : i32
    return %c0_i32, %c0_i32_0 : i32, i32
  }
  func.func @transform_3(%arg0: i32, %arg1: i32) -> (i32, i32) {
    %c0_i32 = arith.constant 0 : i32
    return %arg0, %arg1 : i32, i32
  }
}

</mosaic_0001>

<bundles_post_ra>
// kernel: tpu_custom_call.1
= control target key start
LH: loop header
LB: loop body
LE: loop exit
PB: predicated region body
PF: predicated region fallthrough
CT: control target
= control target key end

     0   :  { %v91_v2 = vmov 0   ;;  %s136_s0 = inlined_call_operand.vmem [shape: f32[12,128], index: 0, kind: input, shape index: {}]   ;;  %s137_s1 = inlined_call_operand.vmem [shape: f32[12,1], index: 1, kind: input, shape index: {}]   ;;  %s138_s2 = inlined_call_operand.vmem [shape: f32[12,1], index: 2, kind: input, shape index: {}]   ;;  %s139_s3 = inlined_call_operand.hbm [shape: f32[12,128], index: 3, kind: output, shape index: {}]  }
   0x1   :  { %v17_v0 = vld [vmem:[%s138_s2] sm:$0xff]  ;;  %68 = vset.pattern.permute.xlu1 %v91_v2  ;;  %67 = vset.pattern.permute.xlu0 %v91_v2 }
   0x2   :  { %v15_v1 = vld [vmem:[%s137_s1] sm:$0xff]  ;;  %35 = vperm.xlu1 %68, %v17_v0  }
   0x3   :  { %23 = vperm.xlu0 %67, %v15_v1  }
   0x4   :  { %8 = vsyncpa [#allocation3], 0  ;;  %v18_v3 = vld [vmem:[%s138_s2 + $0x8] sm:$0xf]  ;;  %v19_v5 = vld [vmem:[%s136_s0] sm:$0xff]  ;;  %s92_s24 = smov [#allocation2]  }
   0x5   :  { %v16_v4 = vld [vmem:[%s137_s1 + $0x8] sm:$0xf]  ;;  %s52_s2 = sshll.u32 %s92_s24, 4  ;;  %s53_s2 = int_to_ptr.vmem [resolvable:$true] %s52_s2 }
   0x6   :  { %40 = vperm.xlu1 %68, %v18_v3   ;;  %v20_v9 = vld [vmem:[%s136_s0 + $0x8] sm:$0xf]  ;;  %s69_s1 = scalar_lea.vmem %s53_s2, 256  ;;  %p74_p1 = scmp.lt.s32.totalorder %s53_s2, %s53_s2 }
   0x7   :  { %28 = vperm.xlu0 %67, %v16_v4   ;;  %p70_p0 = scmp.ne.s32.totalorder %s53_s2, %s69_s1  ;;  %p75_p2 = scmp.lt.s32.totalorder %s69_s1, %s69_s1 }
   0x9   :  { %p76_p3 = por %p75_p2, %p74_p1 }
   0xb   :  { %p77_p4 = pnand %p76_p3, %p70_p0 }
  0x7d   :  { %v36_v6 = vpop.permute.xlu1 %35 }
  0x7e   :  { %v24_v7 = vpop.permute.xlu0 %23 }
  0x7f   :  { %v31_v8 = vmul.f32 %v24_v7, %v19_v5 }
  0x81   :  { %v43_v10 = vadd.f32 %v36_v6, %v31_v8  ;;  %v41_v13 = vpop.permute.xlu1 %40 }
  0x82   :  { %v29_v11 = vpop.permute.xlu0 %28 }
  0x83   :  { %45 = vst [vmem:[#allocation2] sm:$0xff] %v43_v10  ;;  %v32_v12 = vmul.f32 %v29_v11, %v20_v9 }
  0x85   :  { %v44_v14 = vadd.f32 %v41_v13, %v32_v12 }
  0x87   :  { %46 = vst [vmem:[#allocation2 + $0x8] sm:$0xf] %v44_v14 }
  0x88   :  { %80 = shalt.err (!%p77_p4)
}
  0x89   :  { %s93_s25 = smov 128   ;;  %s94_s26 = smov 8  }
  0x8a   :  { %58 = dma.vmem_to_hbm [thread:$0]  %s53_s2, 256, %s139_s3, [#allocation3], %s93_s25, %s93_s25, %s94_s26  }
  0x8b   :  { %89 = dma.done.wait [#allocation3], 256  }
  0x8c   :  { %90 = vsyncadd [#allocation3], 4294967040 }
  0x8d   :  { %62 = vsyncpa [#allocation3], 1 }

</bundles_post_ra>
